<compile_context>
chip_gen: v7x
topology: tpu7x:2x2x1
jax: 0.10.0
libtpu: 0.0.40
codegen_flags: <defaults>
</compile_context>

<pallas_src>
import jax
import jax.numpy as jnp
from jax.experimental import pallas as pl
from jax.experimental.pallas import tpu as pltpu

# ----------------------------- hparams ---------------------------------------
HID = 128         # energies_hidden_dim (real TERMinator default, lane-dense)
OUT_DIM = 400     # energies_output_dim (20*20)
K_NBRS = 8        # k_neighbors (default 30, scaled down)
N_LAYERS = 3      # GNN encoder layers
NUM_RBF = 16
NODE_FEAT = 12    # flattened (X - CA) backbone offsets
EDGE_FEAT = NUM_RBF + 1
VF_PAD = 16       # node-feature pad (12 -> 16), shipped bf16
EF_PAD = 32       # edge-feature pad (17 -> 32), shipped bf16
CA_PAD = 8        # CA coords padded 3 -> 8 for the distance kernel
HPARAMS = dict(use_terms=False, struct2seq_linear=False, struct_predict=False,
               use_transfer_model=False, k_cutoff=0)


# ----------------------------- small helpers ----------------------------------
def _bspec(shape):
    nd = len(shape)
    return pl.BlockSpec((1,) + tuple(shape[1:]),
                        lambda b, _n=nd: (b,) + (0,) * (_n - 1))


def _sspec(shape):
    nd = len(shape)
    return pl.BlockSpec(tuple(shape), lambda b, _n=nd: (0,) * _n)


def _ln(x, g, b, eps=1e-5):
    mu = jnp.mean(x, axis=-1, keepdims=True)
    var = jnp.mean(jnp.square(x - mu), axis=-1, keepdims=True)
    return (x - mu) * jax.lax.rsqrt(var + eps) * g + b


# ----------------------------- Pallas kernels ---------------------------------
def _dist_kernel(ca_ref, d_ref):
    """Pairwise CA-CA distances via the Gram-matrix form (MXU, lane-dense)."""
    ca = ca_ref[0]                                              # (N, CA_PAD) f32
    g = jax.lax.dot_general(ca, ca, (((1,), (1,)), ((), ())),
                            preferred_element_type=jnp.float32)  # (N, N)
    ca_sq = ca * ca
    n2_col = jnp.sum(ca_sq, axis=1, keepdims=True)              # (N, 1)
    # row-norm vector via a tiny matmul: no (N,N) iota/eye + reduce
    ones_row = jnp.ones((1, ca.shape[1]), jnp.float32)
    n2_row = jax.lax.dot_general(ones_row, ca_sq, (((1,), (1,)), ((), ())),
                                 preferred_element_type=jnp.float32)  # (1, N)
    d2 = jnp.maximum(n2_col + n2_row - 2.0 * g, 0.0)
    d_ref[0] = jnp.sqrt(d2 + 1e-6)


def _encoder_kernel(vf_ref, ef_ref, eidx_ref, nmask_ref, amask_ref,
                    wv_emb_ref, we_emb_ref, b_emb_ref,
                    node_wij_ref, node_w_ref, node_wf1_ref, node_wf2_ref,
                    node_b_ref, node_bf1_ref,
                    edge_wij_ref, edge_w_ref, edge_b_ref,
                    w_out_ref, b_out_ref,
                    etab_ref, hv_ref, hc_ref):
    """Fused PairEnergies encoder for one batch element (all state in VMEM)."""
    N = vf_ref.shape[1]
    K = amask_ref.shape[2]
    H = wv_emb_ref.shape[1]
    NK = N * K
    f32 = jnp.float32
    bf16 = jnp.bfloat16

    nmask = nmask_ref[0]                                        # (N, 1) f32
    amask3 = amask_ref[0][:, :, None]                           # (N, K, 1) f32

    # one-hot neighbor-gather matrix, built lane-dense at (NK, N) in bf16.
    # E_idx is shipped pre-reshaped to (NK, 1) so no in-kernel relayout occurs.
    cols = jax.lax.broadcasted_iota(jnp.int32, (NK, N), 1)
    sel = (cols == eidx_ref[0]).astype(bf16)                    # (NK, N) bf16
    # TODO(synk): at realistic N replace this one-hot matmul with a DMA gather.

    def mm(x, w):  # bf16 MXU matmul, f32 accumulation
        return jnp.dot(x.astype(bf16), w, preferred_element_type=f32)

    # ---- node / edge embeddings ----
    b_emb = b_emb_ref[...]                                      # (2, H) f32
    h_V = mm(vf_ref[0], wv_emb_ref[...]) + b_emb[0:1]           # (N, H)
    h_E = mm(ef_ref[0], we_emb_ref[...]) + b_emb[1:2]           # (NK, H)

    inv_k = 1.0 / float(K)  # reference NodeMPNN divides by the constant k ("scale")
    for l in range(N_LAYERS):
        h_E_b = h_E.astype(bf16)         # hoisted: reused for node c_e and edge d_e

        # ---------------- node update ----------------
        nb = node_b_ref[l]                                      # (8, H)
        b1, b2, b3, bf2 = nb[0:1], nb[1:2], nb[2:3], nb[3:4]
        g1, t1, g2, t2 = nb[4:5], nb[5:6], nb[6:7], nb[7:8]
        hvb = h_V.astype(bf16)
        # fused W1_i|W1_j -> one 256-wide MXU tile, split at the 128-lane boundary
        c_ij = jnp.dot(hvb, node_wij_ref[l], preferred_element_type=f32)   # (N, 2H)
        c_i, c_j = c_ij[:, :H], c_ij[:, H:]
        c_e = jnp.dot(h_E_b, node_w_ref[l, 0], preferred_element_type=f32)  # (NK, H)
        c_jg = jnp.dot(sel, c_j.astype(bf16), preferred_element_type=f32)   # (NK, H)
        m = jax.nn.relu((c_e + c_jg).reshape(N, K, H) + c_i[:, None, :] + b1)
        m = m.reshape(NK, H)
        m = jax.nn.relu(mm(m, node_w_ref[l, 1]) + b2)
        m = mm(m, node_w_ref[l, 2]) + b3                                    # (NK, H)
        # masked mean over K neighbors (reshape + VPU reduce, no dense pool matmul)
        dh = jnp.sum(m.reshape(N, K, H) * amask3, axis=1) * inv_k
        x = _ln(h_V + dh, g1, t1)
        ff = jax.nn.relu(mm(x, node_wf1_ref[l]) + node_bf1_ref[l])
        ff = mm(ff, node_wf2_ref[l]) + bf2
        h_V = _ln(x + ff, g2, t2) * nmask

        # ---------------- edge update ----------------
        eb = edge_b_ref[l]                                      # (5, H)
        e1, e2, e3, eg, et = eb[0:1], eb[1:2], eb[2:3], eb[3:4], eb[4:5]
        hvb = h_V.astype(bf16)
        d_ij = jnp.dot(hvb, edge_wij_ref[l], preferred_element_type=f32)    # (N, 2H)
        d_i, d_j = d_ij[:, :H], d_ij[:, H:]
        d_e = jnp.dot(h_E_b, edge_w_ref[l, 0], preferred_element_type=f32)
        d_jg = jnp.dot(sel, d_j.astype(bf16), preferred_element_type=f32)
        me = jax.nn.relu((d_e + d_jg).reshape(N, K, H) + d_i[:, None, :] + e1)
        me = me.reshape(NK, H)
        me = jax.nn.relu(mm(me, edge_w_ref[l, 1]) + e2)
        me = mm(me, edge_w_ref[l, 2]) + e3
        h_E = (_ln(h_E + me, eg, et).reshape(N, K, H) * amask3).reshape(NK, H)

    # ---------------- outputs ----------------
    out_d = etab_ref.shape[3]
    etab = mm(h_E, w_out_ref[...]) + b_out_ref[...]             # (NK, OUT_DIM)
    etab_ref[0] = etab.reshape(N, K, out_d)
    hv_ref[0] = h_V
    s = jnp.sum(h_V * nmask, axis=0, keepdims=True)             # (1, H)
    cnt = jnp.sum(nmask, axis=0, keepdims=True)                 # (1, 1)
    hc_ref[0] = s / jnp.maximum(cnt, 1.0)
    # TODO(synk): h_C in the reference is the chain/condensed embedding from
    # PairEnergies; here it is the masked mean-pooled node embedding.


# ----------------------------- parameters -------------------------------------
def _xavier(key, shape):
    limit = jnp.sqrt(6.0 / (shape[0] + shape[1]))
    return jax.random.uniform(key, shape, jnp.float32, -limit, limit)


def init_params(key):
    H, L = HID, N_LAYERS
    keys = iter(jax.random.split(key, 64))

    def xav(shape):
        return _xavier(next(keys), shape)

    bf = jnp.bfloat16
    W_v = jnp.zeros((VF_PAD, H), jnp.float32).at[:NODE_FEAT].set(xav((NODE_FEAT, H)))
    W_e = jnp.zeros((EF_PAD, H), jnp.float32).at[:EDGE_FEAT].set(xav((EDGE_FEAT, H)))
    return dict(
        W_v_emb=W_v.astype(bf),                                        # (VF_PAD, H)
        W_e_emb=W_e.astype(bf),                                        # (EF_PAD, H)
        b_emb=jnp.zeros((2, H), jnp.float32),
        # per-layer node weights: fused [W1_i | W1_j], then [W1_e, W2, W3]
        node_Wij=jnp.stack([jnp.concatenate([xav((H, H)), xav((H, H))], axis=1)
                            for _ in range(L)]).astype(bf),            # (L, H, 2H)
        node_W=jnp.stack([jnp.stack([xav((H, H)) for _ in range(3)])
                          for _ in range(L)]).astype(bf),              # (L, 3, H, H)
        node_Wf1=jnp.stack([xav((H, 4 * H)) for _ in range(L)]).astype(bf),
        node_Wf2=jnp.stack([xav((4 * H, H)) for _ in range(L)]).astype(bf),
        # [b1, b2, b3, bf2, g1, t1, g2, t2]
        node_b=jnp.zeros((L, 8, H), jnp.float32).at[:, 4].set(1.0).at[:, 6].set(1.0),
        node_bf1=jnp.zeros((L, 1, 4 * H), jnp.float32),
        # per-layer edge weights: fused [W1_i | W1_j], then [W1_e, W2, W3]
        edge_Wij=jnp.stack([jnp.concatenate([xav((H, H)), xav((H, H))], axis=1)
                            for _ in range(L)]).astype(bf),            # (L, H, 2H)
        edge_W=jnp.stack([jnp.stack([xav((H, H)) for _ in range(3)])
                          for _ in range(L)]).astype(bf),              # (L, 3, H, H)
        # [b1, b2, b3, g, t]
        edge_b=jnp.zeros((L, 5, H), jnp.float32).at[:, 3].set(1.0),
        W_out=xav((H, OUT_DIM)).astype(bf),                            # (H, 400)
        b_out=jnp.zeros((1, OUT_DIM), jnp.float32),
    )


# ----------------------------- glue (featurization) ---------------------------
def _rbf(D):
    mu = jnp.linspace(2.0, 22.0, NUM_RBF)
    sigma = (22.0 - 2.0) / NUM_RBF
    return jnp.exp(-jnp.square((D[..., None] - mu) / sigma))


def _gather_nodes(nodes, E_idx):
    B, N, K = E_idx.shape
    H = nodes.shape[-1]
    flat = E_idx.reshape(B, N * K)
    nbr = jnp.take_along_axis(nodes, flat[:, :, None], axis=1)
    return nbr.reshape(B, N, K, H)


def _pairwise_dist(ca):
    """Pallas kernel call: padded CA coords -> (B, N, N) distances."""
    B, N, _ = ca.shape
    return pl.pallas_call(
        _dist_kernel,
        grid=(B,),
        in_specs=[pl.BlockSpec((1, N, CA_PAD), lambda b: (b, 0, 0))],
        out_specs=pl.BlockSpec((1, N, N), lambda b: (b, 0, 0)),
        out_shape=jax.ShapeDtypeStruct((B, N, N), jnp.float32),
        compiler_params=pltpu.CompilerParams(dimension_semantics=("parallel",)),
    )(ca)


def _encoder_call(vf, ef, E_idx, nmask, amask, p):
    """Single fused pallas_call over the batch grid."""
    B, N, _ = vf.shape
    K = E_idx.shape[2]
    NK = N * K
    eidx2 = E_idx.reshape(B, NK, 1)          # pre-reshaped so the kernel builds sel at (NK, N)
    args = [vf, ef, eidx2, nmask, amask,
            p['W_v_emb'], p['W_e_emb'], p['b_emb'],
            p['node_Wij'], p['node_W'], p['node_Wf1'], p['node_Wf2'],
            p['node_b'], p['node_bf1'],
            p['edge_Wij'], p['edge_W'], p['edge_b'],
            p['W_out'], p['b_out']]
    batched = [True] * 5 + [False] * 14
    in_specs = [_bspec(a.shape) if bt else _sspec(a.shape)
                for a, bt in zip(args, batched)]
    out_shape = (jax.ShapeDtypeStruct((B, N, K, OUT_DIM), jnp.float32),
                 jax.ShapeDtypeStruct((B, N, HID), jnp.float32),
                 jax.ShapeDtypeStruct((B, 1, HID), jnp.float32))
    out_specs = (_bspec((B, N, K, OUT_DIM)), _bspec((B, N, HID)), _bspec((B, 1, HID)))
    return pl.pallas_call(
        _encoder_kernel,
        grid=(B,),
        in_specs=in_specs,
        out_specs=out_specs,
        out_shape=out_shape,
        compiler_params=pltpu.CompilerParams(
            dimension_semantics=("parallel",),
            vmem_limit_bytes=64 * 1024 * 1024),
    )(*args)


# ----------------------------- forward -----------------------------------------
def terminator_forward(params, data, max_seq_len=None):
    """Mirrors TERMinator.forward -> (etab, h_V, h_C, E_idx, frames, positions)."""
    X = data['X']
    x_mask = data['x_mask'].astype(jnp.float32)
    B, N = X.shape[:2]
    K = K_NBRS

    # ---- kNN graph: Gram-form CA distances (Pallas), top-k in XLA glue ----
    ca = X[:, :, 1, :]                                           # (B, N, 3)
    ca_p = jnp.pad(ca, ((0, 0), (0, 0), (0, CA_PAD - 3)))
    D = _pairwise_dist(ca_p)                                     # (B, N, N)
    mask2d = x_mask[:, :, None] * x_mask[:, None, :]
    D_adj = D * mask2d + (1.0 - mask2d) * 1e6
    # NOTE: self-edges are kept (nearest neighbor is the residue itself), matching
    # the reference ProteinFeatures kNN behavior.
    _, E_idx = jax.lax.top_k(-D_adj, K)                          # (B, N, K) int32

    # ---- features (plain-JAX glue, bf16 at narrow padded widths) ----
    vf = (X - ca[:, :, None, :]).reshape(B, N, NODE_FEAT)
    vf = jnp.pad(vf, ((0, 0), (0, 0), (0, VF_PAD - NODE_FEAT))).astype(jnp.bfloat16)
    D_nbr = jnp.take_along_axis(D, E_idx, axis=2)                # (B, N, K)
    rel = (E_idx.astype(jnp.float32)
           - jnp.arange(N, dtype=jnp.float32)[None, :, None]) / float(N)
    ef = jnp.concatenate([_rbf(D_nbr), rel[..., None]], axis=-1)  # (B, N, K, 17)
    ef = ef.reshape(B, N * K, EDGE_FEAT)
    ef = jnp.pad(ef, ((0, 0), (0, 0), (0, EF_PAD - EDGE_FEAT))).astype(jnp.bfloat16)

    # ---- masks ----
    nmask = x_mask[:, :, None]                                   # (B, N, 1)
    mask_j = _gather_nodes(x_mask[..., None], E_idx)[..., 0]     # (B, N, K)
    amask = x_mask[:, :, None] * mask_j                          # (B, N, K)

    # ---- fused encoder (embed + GNN layers + output projection) ----
    etab, h_V, h_C = _encoder_call(vf, ef, E_idx, nmask, amask, params)
    h_C = h_C[:, 0, :]                                           # (B, H)

    if HPARAMS['k_cutoff']:
        kc = HPARAMS['k_cutoff']
        etab = etab[..., :kc, :]
        E_idx = E_idx[..., :kc]

    frames, positions = None, None                               # struct_predict=False
    return etab, h_V, h_C, E_idx, frames, positions


# ----------------------------- main --------------------------------------------
if __name__ == "__main__":
    key = jax.random.PRNGKey(0)
    k_x, k_p = jax.random.split(key)
    B, N = 2, 16
    # synthetic backbone: residues roughly along a line + noise (so kNN is non-trivial)
    base = jnp.arange(N, dtype=jnp.float32)[None, :, None, None] * 3.8
    X = base * jnp.array([1.0, 0.0, 0.0])[None, None, None, :] \
        + jax.random.normal(k_x, (B, N, 4, 3), jnp.float32)
    data = {
        'X': X,
        'x_mask': jnp.ones((B, N), jnp.float32),
        'chain_idx': jnp.zeros((B, N), jnp.int32),
        'seqs': jnp.zeros((B, N), jnp.int32),
    }
    params = init_params(k_p)

    etab, h_V, h_C, E_idx, frames, positions = terminator_forward(params, data, max_seq_len=N)
    jax.block_until_ready((etab, h_V, h_C, E_idx))

    assert etab.shape == (B, N, K_NBRS, OUT_DIM)
    assert E_idx.shape == (B, N, K_NBRS) and E_idx.dtype == jnp.int32
    assert h_V.shape == (B, N, HID)
    assert h_C.shape == (B, HID)
    assert frames is None and positions is None
    print("KERNEL_OK")
</pallas_src>

<mosaic_0001>
module attributes {stable_mosaic.version = 11 : i64} {
  func.func @_dist_kernel(%arg0: i32, %arg1: memref<1x16x8xf32, #tpu.memory_space<vmem>>, %arg2: memref<1x16x16xf32, #tpu.memory_space<vmem>>) attributes {dimension_semantics = [#tpu.dimension_semantics<parallel>], iteration_bounds = array<i64: 2>, scalar_prefetch = 0 : i64, scratch_operands = 0 : i64, tpu.core_type = #tpu.core_type<tc>, window_params = [{transform_indices = @transform_0, window_bounds = array<i64: 1, 16, 8>}, {transform_indices = @transform_1, window_bounds = array<i64: 1, 16, 16>}]} {
    %c0 = arith.constant 0 : index
    %c0_0 = arith.constant 0 : index
    %c0_1 = arith.constant 0 : index
    %0 = vector.load %arg1[%c0, %c0_0, %c0_1] : memref<1x16x8xf32, #tpu.memory_space<vmem>>, vector<1x16x8xf32>
    %1 = vector.shape_cast %0 : vector<1x16x8xf32> to vector<16x8xf32>
    %cst = arith.constant dense<0.000000e+00> : vector<16x16xf32>
    %2 = tpu.matmul %1, %1, %cst {dimension_numbers = #tpu.dot_dimension_numbers<[1], [1], [0], [0], [0, 0, 1, 0], [], []>} : vector<16x8xf32>, vector<16x8xf32>, vector<16x16xf32> -> vector<16x16xf32>
    %3 = arith.mulf %1, %1 : vector<16x8xf32>
    %cst_2 = arith.constant dense<0.000000e+00> : vector<16xf32>
    %4 = vector.multi_reduction <add>, %3, %cst_2 [1] : vector<16x8xf32> to vector<16xf32>
    %5 = vector.shape_cast %4 : vector<16xf32> to vector<16x1xf32>
    %cst_3 = arith.constant 1.000000e+00 : f32
    %6 = vector.broadcast %cst_3 : f32 to vector<1x8xf32>
    %cst_4 = arith.constant dense<0.000000e+00> : vector<1x16xf32>
    %7 = tpu.matmul %6, %3, %cst_4 {dimension_numbers = #tpu.dot_dimension_numbers<[1], [1], [0], [0], [0, 0, 1, 0], [], []>} : vector<1x8xf32>, vector<16x8xf32>, vector<1x16xf32> -> vector<1x16xf32>
    %8 = vector.broadcast %5 : vector<16x1xf32> to vector<16x16xf32>
    %9 = vector.broadcast %7 : vector<1x16xf32> to vector<16x16xf32>
    %10 = arith.addf %8, %9 : vector<16x16xf32>
    %cst_5 = arith.constant 2.000000e+00 : f32
    %11 = vector.broadcast %cst_5 : f32 to vector<16x16xf32>
    %12 = arith.mulf %11, %2 : vector<16x16xf32>
    %13 = arith.subf %10, %12 : vector<16x16xf32>
    %cst_6 = arith.constant 0.000000e+00 : f32
    %14 = vector.broadcast %cst_6 : f32 to vector<16x16xf32>
    %15 = arith.maximumf %13, %14 : vector<16x16xf32>
    %cst_7 = arith.constant 9.99999997E-7 : f32
    %16 = vector.broadcast %cst_7 : f32 to vector<16x16xf32>
    %17 = arith.addf %15, %16 : vector<16x16xf32>
    %18 = math.sqrt %17 : vector<16x16xf32>
    %c0_8 = arith.constant 0 : index
    %c0_9 = arith.constant 0 : index
    %c0_10 = arith.constant 0 : index
    %19 = vector.load %arg2[%c0_8, %c0_9, %c0_10] : memref<1x16x16xf32, #tpu.memory_space<vmem>>, vector<1x16x16xf32>
    %20 = vector.shape_cast %19 : vector<1x16x16xf32> to vector<16x16xf32>
    %21 = vector.shape_cast %18 : vector<16x16xf32> to vector<1x16x16xf32>
    tpu.vector_store %arg2[%c0_8, %c0_9, %c0_10], %21 {strides = array<i32>} : memref<1x16x16xf32, #tpu.memory_space<vmem>>, vector<1x16x16xf32>,
    return
  }
  func.func @transform_0(%arg0: i32) -> (i32, i32, i32) {
    %c0_i32 = arith.constant 0 : i32
    %c0_i32_0 = arith.constant 0 : i32
    %c0_i32_1 = arith.constant 0 : i32
    return %arg0, %c0_i32, %c0_i32_0 : i32, i32, i32
  }
  func.func @transform_1(%arg0: i32) -> (i32, i32, i32) {
    %c0_i32 = arith.constant 0 : i32
    %c0_i32_0 = arith.constant 0 : i32
    %c0_i32_1 = arith.constant 0 : i32
    return %arg0, %c0_i32, %c0_i32_0 : i32, i32, i32
  }
}

</mosaic_0001>

<bundles_post_ra>
// kernel: tpu_custom_call.1
= control target key start
LH: loop header
LB: loop body
LE: loop exit
PB: predicated region body
PF: predicated region fallthrough
CT: control target
= control target key end

     0   :  { %6 = vsyncpa [#allocation3], 0  ;;  %s685_s0 = inlined_call_operand.vmem [shape: f32[2,16,8], index: 0, kind: input, shape index: {}]   ;;  %s686_s1 = inlined_call_operand.hbm [shape: f32[2,16,16], index: 1, kind: output, shape index: {}]  }
   0x1   :  { %8 = vsyncpa [#allocation3 + $0x1], 0  ;;  %s575_s6 = smov 0   ;;  %s577_s7 = smov 0  }
   0x2   :  { %s579_s8 = smov 0   ;;  %s581_s9 = smov 0  }
   0x3 LB: > { %s596_s10 = sadd.s32 4294967295, %s556_s9   ;;  %s393_s11 = sadd.s32 4294967294, %s556_s9   ;;  %s556_s9 = sphi %s581_s9, %s692_s9   ;;  %s552_s8 = sphi %s579_s8, %s691_s8   ;;  %s548_s7 = sphi %s577_s7, %s690_s7   ;;  %s544_s6 = sphi %s575_s6, %s689_s6  }
   0x4   : > { %s600_s12 = sadd.s32 1, %s556_s9   ;;  %s47_s13 = sadd.s32 1, %s552_s8 }
   0x5   : > { %s44_s14 = ssub.s32 %s556_s9, %s600_s12  ;;  %p57_p0 = scmp.ne.s32.totalorder %s552_s8, %s548_s7 }
   0x6   : > { %p45_p1 = scmp.eq.s32.totalorder %s44_s14, 0  ;;  %p58_p2 = scmp.eq.s32.totalorder %s596_s10, 1 }
   0x7   : > { %p63_p3 = scmp.ne.s32.totalorder %s548_s7, %s544_s6  ;;  %p64_p4 = scmp.eq.s32.totalorder %s393_s11, 1 }
   0x8   : > { %s611_s15 = scalar_select %p45_p1, %s552_s8, %s47_s13  }
   0x9   : > { %p613_p5 = por %p58_p2, %p57_p0  ;;  %p617_p6 = por %p64_p4, %p63_p3 }
   0xa   : > { %p396_p7 = scmp.ge.s32.totalorder %s556_s9, 1  ;;  %p90_p8 = scmp.lt.s32.totalorder %s556_s9, 3 }
   0xc   : > { %p91_p9 = pnand %p396_p7, %p90_p8 }
   0xd   : > { %p110_p10 = scmp.lt.s32.totalorder (!%p91_p9), %s596_s10, 1  ;;  %v558_v0 = vmov (!%p91_p9), 0.0|0.0   ;;  %vm559_vm0 = vmmov (!%p91_p9), 0   ;;  %v560_v1 = vmov (!%p91_p9), 0.0   ;;  %vm117_vm1 = vcmask (!%p91_p9), 64512   ;;  %s107_s23 = sand.u32 (!%p91_p9), 1, %s548_s7  }
   0xe   : > { %94 = sbr.rel (%p91_p9) target bundleno = 290 (0x122), region = 24  ;;  %441 = vmatprep.subr.bf16.mxu1 (!%p91_p9), %v558_v0  ;;  %432 = vmatprep.mubr.msk.f32.mxu1 (!%p91_p9), %vm559_vm0, %v560_v1  ;;  %vm436_vm2 = vmpackc.low (!%p91_p9), %vm117_vm1, %vm117_vm1  ;;  %v561_v10 = vmov (!%p91_p9), 1.0   ;;  %v286_v11 = vlaneseq (!%p91_p9)  ;;  %s397_s24 = sshll.u32 (!%p91_p9), %s107_s23, 4  ;;  %vm314_vm4 = vcmask (!%p91_p9), 130048  }
   0xf   : > { %s413_s25 = sshll.u32 (!%p91_p9), %s596_s10, 8  ;;  %s109_s26 = scalar_lea.vmem (!%p91_p9), [#allocation2], %s397_s24 }
  0x10   : > { %v287_v13 = vshrl.u32 (!%p91_p9), %v286_v11, 7  ;;  %s331_s27 = sshll.u32 (!%p91_p9), %s109_s26, 4  ;;  %s640_s30 = scalar_lea.hbm (!%p91_p9), %s686_s1, %s413_s25  ;;  %s642_s27 = int_to_ptr.vmem [resolvable:$true] %s331_s27 }
  0x11   : > { %s644_s2 = scalar_lea.sflag (!%p91_p9), [#allocation3], %s107_s23  ;;  %s494_s3 = scalar_lea.vmem (!%p91_p9), %s642_s27, 256 }
  0x12   : > { %v288_v14 = vsub.s32 (!%p91_p9), 0, %v287_v13  ;;  %p495_p11 = scmp.ne.s32.totalorder (!%p91_p9), %s642_s27, %s494_s3  ;;  %s562_s4 = smov (!%p91_p9), [#allocation2]  }
  0x13   : > { %s498_s5 = sshll.u32 (!%p91_p9), %s562_s4, 4  ;;  %s499_s5 = int_to_ptr.vmem [resolvable:$false] %s498_s5 }
  0x14   : > { %p496_p12 = pnand (!%p91_p9), %p495_p11, %p613_p5  ;;  %p501_p0 = scmp.lt.s32.totalorder (!%p91_p9), %s642_s27, %s499_s5 }
  0x15   : > { %s111_s18 = scalar_select %p110_p10, %s596_s10, 1 }
  0x16   : > { %p497_p13 = pneg %p496_p12  ;;  %s500_s10 = scalar_lea.vmem %s499_s5, 512 }
  0x17   : > { %s412_s19 = sshll.u32 %s111_s18, 4  ;;  %p502_p1 = scmp.lt.s32.totalorder %s500_s10, %s494_s3 }
  0x18   : > { %s114_s22 = scalar_lea.vmem %s685_s0, %s412_s19 }
  0x19   : > { %v115_v2 = vld [vmem:[%s114_s22] sm:$0xff]  ;;  %v116_v3 = vld [vmem:[%s114_s22 + $0x8] sm:$0xff]  ;;  %p503_p2 = por %p502_p1, %p501_p0 }
  0x1a   : > { %v435_v4 = vpack.c.bf16 %v116_v3, %v115_v2  ;;  %v199_v5 = vmul.f32 %v115_v2, %v115_v2  ;;  %v200_v6 = vmul.f32 %v116_v3, %v116_v3  ;;  %425 = vmatprep.mubr.msk.f32.mxu0 %vm117_vm1, %v115_v2 }
  0x1b   : > { %p504_p3 = pnand %p503_p2, %p497_p13 }
  0x1c   : > { %437 = vmatprep.subr.msk.bf16.mxu0 %vm436_vm2, %v435_v4  ;;  %v442_v7 = vpack.c.bf16 %v200_v6, %v199_v5  ;;  %v201_v8 = vsel %vm117_vm1, %v199_v5, 0.0  ;;  %v204_v9 = vsel %vm117_vm1, %v200_v6, 0.0 }
  0x1d   : > { %440 = vmatpush3.bf16.xpose.msk.msra.mxu0 %vm436_vm2, %v435_v4  ;;  %202 = vadd.xlane.f32.xlu0 %v201_v8 }
  0x1e   : > { %444 = vmatpush3.bf16.xpose.msk.msra.mxu1 %vm436_vm2, %v442_v7 }
  0x21   : > { %205 = vadd.xlane.f32.xlu0 %v204_v9 }
  0x24   : > { %426 = vmatmul.mubr.msk.f32.vlgmr.msra.gmra.mrb[0].mxu0 %vm117_vm1, %v116_v3 }
  0x25   : > { %433 = vmatmul.mubr.msk.f32.vlgmr.msra.gmra.mrb[0].mxu1 %vm117_vm1, %v561_v10 }
  0xaa   : > { %v203_v12 = vpop.xlane.xlu0 %202 }
  0xae   : > { %v206_v16 = vpop.xlane.xlu0 %205 }
  0xf7   : > { %v427_v15 = vpop.f32.mrb[0].mxu0 }
  0xf8   : > { %v282_v17 = vpop.f32.mrb[0].mxu1  ;;  %v190_v18 = vpop.f32.mrb[1].mxu0  ;;  %v293_v19 = vmul.f32 2.0, %v427_v15 }
  0xf9   : > { %v289_v20 = vrot.slane %v282_v17, %v288_v14  ;;  %v292_v21 = vmul.f32 2.0, %v190_v18  ;;  %v434_v22 = vpop.f32.mrb[1].mxu1 }
  0xfb   : > { %v290_v23 = vadd.f32 %v289_v20, %v203_v12  ;;  %v291_v24 = vadd.f32 %v289_v20, %v206_v16 }
  0xfd   : > { %v294_v25 = vsub.f32 %v290_v23, %v292_v21  ;;  %v295_v26 = vsub.f32 %v291_v24, %v293_v19 }
  0xff   : > { %v296_v27 = vmax.f32 %v294_v25, 0.0  ;;  %v297_v28 = vmax.f32 %v295_v26, 0.0 }
 0x101   : > { %v298_v29 = vadd.f32 1e-06, %v296_v27  ;;  %v299_v30 = vadd.f32 1e-06, %v297_v28 }
 0x103   : > { %490 = vrsqrt.f32 %v298_v29  ;;  %vm302_vm3 = vcmp.eq.f32.partialorder %v298_v29, inf  ;;  %v305_v34 = vand.u32 2147483648, %v298_v29  ;;  %vm304_vm5 = vcmp.eq.f32.partialorder %v298_v29, 0.0 }
 0x104   : > { %492 = vrsqrt.f32 %v299_v30  ;;  %vm309_vm6 = vcmp.eq.f32.partialorder %v299_v30, inf  ;;  %v312_v37 = vand.u32 2147483648, %v299_v30  ;;  %vm311_vm7 = vcmp.eq.f32.partialorder %v299_v30, 0.0 }
 0x10d   : > { %v491_v31 = vpop.eup %490 }
 0x10e   : > { %v493_v32 = vpop.eup %492  ;;  %v301_v33 = vmul.f32 %v491_v31, %v298_v29 }
 0x10f   : > { %v308_v35 = vmul.f32 %v493_v32, %v299_v30 }
 0x110   : > { %v303_v36 = vsel %vm302_vm3, %v298_v29, %v301_v33 }
 0x111   : > { %v306_v38 = vsel %vm304_vm5, %v305_v34, %v303_v36  ;;  %v310_v39 = vsel %vm309_vm6, %v299_v30, %v308_v35 }
 0x112   : > { %v313_v40 = vsel %vm311_vm7, %v312_v37, %v310_v39  ;;  %315 = vst.msk [vmem:[%s109_s26] sm:$0xff] %vm314_vm4, %v306_v38 }
 0x113   : > { %316 = vst.msk [vmem:[%s109_s26 + $0x8] sm:$0xff] %vm314_vm4, %v313_v40 }
 0x114   : > { %507 = shalt.err (!%p504_p3)
}
 0x115   : > { %s508_s11 = scalar_lea.hbm %s640_s30, 256  ;;  %s512_s18 = scalar_lea.hbm %s686_s1, 512 }
 0x116   : > { %p509_p4 = scmp.ne.s32.totalorder %s640_s30, %s508_s11  ;;  %p513_p9 = scmp.lt.u32.totalorder %s640_s30, %s686_s1 }
 0x117   : > { %p514_p10 = scmp.lt.u32.totalorder %s512_s18, %s508_s11  ;;  %p516_p12 = scmp.lt.u32.totalorder %s508_s11, %s640_s30 }
 0x118   : > { %p510_p7 = pnand %p509_p4, %p613_p5 }
 0x119   : > { %p515_p11 = por %p514_p10, %p513_p9 }
 0x11a   : > { %p511_p8 = pneg %p510_p7 }
 0x11b   : > { %p517_p13 = por %p516_p12, %p515_p11 }
 0x11d   : > { %p518_p0 = pnand %p517_p13, %p511_p8 }
 0x11f   : > { %521 = shalt.err (!%p518_p0)
}
 0x120   : > { %s563_s21 = smov 128   ;;  %s564_s22 = smov 8  }
 0x121   : > { %445 = dma.vmem_to_hbm [thread:$0]  (%p613_p5), %s642_s27, 256, %s640_s30, %s644_s2, %s563_s21, %s563_s21, %s564_s22  }
 0x122 PF: > { %p451_p1 = scmp.ge.s32.totalorder %s556_s9, 2  ;;  %s346_s23 = sand.u32 1, %s544_s6  }
 0x123   : > { %s347_s24 = scalar_lea.sflag [#allocation3], %s346_s23 }
 0x124   : > { %p448_p2 = pnand %p451_p1, %p617_p6 }
 0x126   : > { %539 = dma.done.wait (!%p448_p2), %s347_s24, 256  }
 0x127   : > { %541 = vsyncadd (!%p448_p2), %s347_s24, 4294967040  ;;  %p11_p3 = scmp.ge.s32.totalorder %s600_s12, 4   ;;  %s689_s6 = smov %s548_s7 }
 0x128   : > { %s690_s7 = smov %s552_s8  ;;  %s691_s8 = smov %s611_s15 }
 0x129   : > { %s692_s9 = smov %s600_s12  ;;  %13 = sbr.rel (!%p11_p3) target bundleno = 3 (0x3), region = 59 }
 0x130   :  { %352 = vsyncpa [#allocation3], 1 }
 0x131   :  { %354 = vsyncpa [#allocation3 + $0x1], 1 }

</bundles_post_ra>
